<compile_context>
chip_gen: v7x
topology: tpu7x:2x2x1
jax: 0.10.0
libtpu: 0.0.40
codegen_flags: <defaults>
</compile_context>

<pallas_src>
import jax
import jax.numpy as jnp
from jax.experimental import pallas as pl
from jax.experimental.pallas import tpu as pltpu


# ---------------------------------------------------------------------------
# Problem sizes (small, consistent with the module: 70 = 10 lanes x 7,
# 30 = 10 lanes x 3 categories).
# ---------------------------------------------------------------------------
B = 2            # batch
C_IN = 4         # input channels
H = W = 16       # spatial
C_FEAT = 32      # backbone feature width == Linear in_features ("hidden")
N_REG = 70       # regular_outputs_layer out_features
N_EXT = 30       # extra_outputs_layer out_features
N_HEADS = N_REG + N_EXT   # 100
N_PAD = 128               # lane-dense padded head width
KH = KW = 3      # conv kernel
HWP = H * W      # spatial positions per image (256)
K_CONV = KH * KW * C_IN   # 36
K_PAD = 128               # conv contraction dim padded to a full MXU pass
M_ROWS = B * HWP          # 512


# ---------------------------------------------------------------------------
# Pallas kernel: one K=128 im2col-conv matmul (+bias via ones column) + ReLU
# + global sum-pool + one fused-heads matmul.
#   patches_ref: [M_ROWS, K_PAD]      bf16  (im2col, col 36 = 1.0, rest 0-pad)
#   wconv_ref  : [K_PAD, C_FEAT]      bf16  (rows 0..35 weight, row 36 bias)
#   whead_ref  : [C_FEAT + 1, N_PAD]  bf16  (rows 0..31 = concat heads / HWP,
#                                            row 32 = concat head biases)
#   out_ref    : [B, N_PAD]           f32   (cols 0:70 regular, 70:100 extra)
# ---------------------------------------------------------------------------
def jstnet_kernel(patches_ref, wconv_ref, whead_ref, out_ref):
    # Fused 3x3 "same" conv + bias as ONE full-K matmul, f32 accumulation.
    conv = jnp.dot(patches_ref[...], wconv_ref[...],
                   preferred_element_type=jnp.float32)        # [512, 32] f32
    conv = jnp.maximum(conv, 0.0)                             # ReLU

    # Global average pool: sum here, 1/HWP folded into head weights.
    feat = jnp.sum(conv.reshape(B, HWP, C_FEAT), axis=1)      # [B, 32] f32

    # Both heads fused into one lane-dense matmul; weight slice starts at
    # sublane 0, bias row at sublane 32 (both 8-aligned -> free static views).
    head = jnp.dot(feat.astype(jnp.bfloat16), whead_ref[0:C_FEAT, :],
                   preferred_element_type=jnp.float32)        # [B, 128] f32
    head = head + whead_ref[C_FEAT:C_FEAT + 1, :].astype(jnp.float32)
    out_ref[...] = head                                       # unmasked stores


# ---------------------------------------------------------------------------
# Wrapper: wrapper-side im2col (lane-dense patch matrix) + one pallas_call,
# heads sliced outside (cheap).
# ---------------------------------------------------------------------------
def jstnet_forward(x_nchw, packed_params):
    """Forward pass: returns (output [B, 70], extra_outputs [B, 30])."""
    wconv_buf, whead_buf = packed_params

    # NCHW -> NHWC, zero-pad for the 3x3 "same" conv, im2col (pure XLA glue).
    x_nhwc = jnp.transpose(x_nchw, (0, 2, 3, 1))
    x_pad = jnp.pad(x_nhwc, ((0, 0), (1, 1), (1, 1), (0, 0)))   # [B,H+2,W+2,C]
    wins = [x_pad[:, dy:dy + H, dx:dx + W, :]
            for dy in range(KH) for dx in range(KW)]            # 9 x [B,H,W,C]
    patches = jnp.concatenate(wins, axis=-1).reshape(M_ROWS, K_CONV)
    ones = jnp.ones((M_ROWS, 1), patches.dtype)                 # conv-bias col
    patches = jnp.concatenate([patches, ones], axis=-1)         # [512, 37]
    patches = jnp.pad(patches, ((0, 0), (0, K_PAD - (K_CONV + 1))))
    patches = patches.astype(jnp.bfloat16)                      # [512, 128]

    out_pad = pl.pallas_call(
        jstnet_kernel,
        out_shape=jax.ShapeDtypeStruct((B, N_PAD), jnp.float32),
        in_specs=[
            pl.BlockSpec((M_ROWS, K_PAD), lambda: (0, 0)),
            pl.BlockSpec((K_PAD, C_FEAT), lambda: (0, 0)),
            pl.BlockSpec((C_FEAT + 1, N_PAD), lambda: (0, 0)),
        ],
        out_specs=pl.BlockSpec((B, N_PAD), lambda: (0, 0)),
    )(patches, wconv_buf, whead_buf)

    # regular_outputs_layer / extra_outputs_layer (cheap slices outside).
    return out_pad[:, :N_REG], out_pad[:, N_REG:N_HEADS]


# ---------------------------------------------------------------------------
# Deterministic synthetic parameters (raw f32) + packing for the kernel.
# ---------------------------------------------------------------------------
def init_raw_params(key):
    k0, k1, k2, k3, k4, k5 = jax.random.split(key, 6)
    # PyTorch conv weight layout [C_out, C_in, kh, kw].
    wconv_pt = 0.1 * jax.random.normal(k0, (C_FEAT, C_IN, KH, KW), jnp.float32)
    bconv = 0.01 * jax.random.normal(k1, (C_FEAT,), jnp.float32)
    # regular_outputs_layer: Linear(C_FEAT, 70); extra_outputs_layer: (C_FEAT, 30)
    wreg = 0.1 * jax.random.normal(k2, (C_FEAT, N_REG), jnp.float32)
    breg = 0.01 * jax.random.normal(k3, (N_REG,), jnp.float32)
    wext = 0.1 * jax.random.normal(k4, (C_FEAT, N_EXT), jnp.float32)
    bext = 0.01 * jax.random.normal(k5, (N_EXT,), jnp.float32)
    return wconv_pt, bconv, wreg, breg, wext, bext


def pack_params(raw):
    wconv_pt, bconv, wreg, breg, wext, bext = raw

    # [C_out, C_in, kh, kw] -> im2col order [(dy, dx, c_in), C_out], matching
    # the (dy, dx) window concatenation order in the wrapper.
    wconv = jnp.transpose(wconv_pt, (2, 3, 1, 0)).reshape(K_CONV, C_FEAT)
    wconv_buf = jnp.zeros((K_PAD, C_FEAT), jnp.float32)
    wconv_buf = wconv_buf.at[:K_CONV].set(wconv)
    wconv_buf = wconv_buf.at[K_CONV].set(bconv)          # bias dotted w/ ones col
    wconv_buf = wconv_buf.astype(jnp.bfloat16)           # [128, 32]

    # Head buffer: rows 0..31 = concat(wreg, wext)/HWP (mean-pool folded in),
    # row 32 = concat(breg, bext); lane-padded to 128.
    w_heads = jnp.concatenate([wreg, wext], axis=1) * (1.0 / HWP)   # [32, 100]
    b_heads = jnp.concatenate([breg, bext], axis=0)[None, :]        # [1, 100]
    whead = jnp.concatenate([w_heads, b_heads], axis=0)             # [33, 100]
    whead_buf = jnp.pad(whead, ((0, 0), (0, N_PAD - N_HEADS)))
    whead_buf = whead_buf.astype(jnp.bfloat16)                      # [33, 128]

    return wconv_buf, whead_buf


# ---------------------------------------------------------------------------
# Pure-JAX f32 reference (same math, mean-then-matmul order) for a sanity
# check with a bf16-appropriate tolerance.
# ---------------------------------------------------------------------------
def jstnet_reference(x_nchw, raw):
    wconv_pt, bconv, wreg, breg, wext, bext = raw
    x_nhwc = jnp.transpose(x_nchw, (0, 2, 3, 1))
    x_pad = jnp.pad(x_nhwc, ((0, 0), (1, 1), (1, 1), (0, 0)))
    wins = [x_pad[:, dy:dy + H, dx:dx + W, :]
            for dy in range(KH) for dx in range(KW)]
    patches = jnp.concatenate(wins, axis=-1).reshape(B * HWP, K_CONV)
    wconv = jnp.transpose(wconv_pt, (2, 3, 1, 0)).reshape(K_CONV, C_FEAT)
    conv = jnp.maximum(patches @ wconv + bconv[None, :], 0.0)
    feat = jnp.mean(conv.reshape(B, HWP, C_FEAT), axis=1)
    return feat @ wreg + breg[None, :], feat @ wext + bext[None, :]


if __name__ == "__main__":
    key = jax.random.PRNGKey(0)
    kx, kp = jax.random.split(key)
    # PyTorch NCHW input, small shapes.
    x = jax.random.normal(kx, (B, C_IN, H, W), dtype=jnp.float32)
    raw = init_raw_params(kp)
    packed = pack_params(raw)

    out, extra = jax.jit(jstnet_forward)(x, packed)
    jax.block_until_ready((out, extra))

    assert out.shape == (B, N_REG) and out.dtype == jnp.float32
    assert extra.shape == (B, N_EXT) and extra.dtype == jnp.float32
    assert bool(jnp.all(jnp.isfinite(out))) and bool(jnp.all(jnp.isfinite(extra)))

    # Loose-tolerance parity vs. f32 reference (operands are bf16 in-kernel).
    out_ref, extra_ref = jstnet_reference(x, raw)
    assert bool(jnp.allclose(out, out_ref, rtol=5e-2, atol=5e-2))
    assert bool(jnp.allclose(extra, extra_ref, rtol=5e-2, atol=5e-2))

    # TODO(synk): JSTNET.loss/.decode (masked MSE/BCE/CE bookkeeping, sigmoid
    # thresholded decoding) are host/training utilities, not part of forward();
    # left out of the kernel.
    print("KERNEL_OK")
</pallas_src>

<mosaic_0001>
module attributes {stable_mosaic.version = 11 : i64} {
  func.func @jstnet_kernel(%arg0: memref<512x128xbf16, #tpu.memory_space<vmem>>, %arg1: memref<128x32xbf16, #tpu.memory_space<vmem>>, %arg2: memref<33x128xbf16, #tpu.memory_space<vmem>>, %arg3: memref<2x128xf32, #tpu.memory_space<vmem>>) attributes {dimension_semantics = [], scalar_prefetch = 0 : i64, scratch_operands = 0 : i64, tpu.core_type = #tpu.core_type<tc>} {
    %c0 = arith.constant 0 : index
    %c0_0 = arith.constant 0 : index
    %0 = vector.load %arg0[%c0, %c0_0] : memref<512x128xbf16, #tpu.memory_space<vmem>>, vector<512x128xbf16>
    %c0_1 = arith.constant 0 : index
    %c0_2 = arith.constant 0 : index
    %1 = vector.load %arg1[%c0_1, %c0_2] : memref<128x32xbf16, #tpu.memory_space<vmem>>, vector<128x32xbf16>
    %cst = arith.constant dense<0.000000e+00> : vector<512x32xf32>
    %2 = tpu.matmul %0, %1, %cst {dimension_numbers = #tpu.dot_dimension_numbers<[1], [0], [0], [1], [0, 0, 1, 1], [], []>} : vector<512x128xbf16>, vector<128x32xbf16>, vector<512x32xf32> -> vector<512x32xf32>
    %cst_3 = arith.constant 0.000000e+00 : f32
    %3 = vector.broadcast %cst_3 : f32 to vector<512x32xf32>
    %4 = arith.maximumf %2, %3 : vector<512x32xf32>
    %5 = vector.shape_cast %4 : vector<512x32xf32> to vector<2x256x32xf32>
    %cst_4 = arith.constant dense<0.000000e+00> : vector<2x32xf32>
    %6 = vector.multi_reduction <add>, %5, %cst_4 [1] : vector<2x256x32xf32> to vector<2x32xf32>
    %7 = arith.truncf %6 : vector<2x32xf32> to vector<2x32xbf16>
    %c0_5 = arith.constant 0 : index
    %c0_6 = arith.constant 0 : index
    %8 = vector.load %arg2[%c0_5, %c0_6] : memref<33x128xbf16, #tpu.memory_space<vmem>>, vector<32x128xbf16>
    %cst_7 = arith.constant dense<0.000000e+00> : vector<2x128xf32>
    %9 = tpu.matmul %7, %8, %cst_7 {dimension_numbers = #tpu.dot_dimension_numbers<[1], [0], [0], [1], [0, 0, 1, 1], [], []>} : vector<2x32xbf16>, vector<32x128xbf16>, vector<2x128xf32> -> vector<2x128xf32>
    %c32 = arith.constant 32 : index
    %c0_8 = arith.constant 0 : index
    %10 = vector.load %arg2[%c32, %c0_8] : memref<33x128xbf16, #tpu.memory_space<vmem>>, vector<1x128xbf16>
    %11 = arith.extf %10 : vector<1x128xbf16> to vector<1x128xf32>
    %12 = vector.broadcast %11 : vector<1x128xf32> to vector<2x128xf32>
    %13 = arith.addf %9, %12 : vector<2x128xf32>
    %c0_9 = arith.constant 0 : index
    %c0_10 = arith.constant 0 : index
    %14 = vector.load %arg3[%c0_9, %c0_10] : memref<2x128xf32, #tpu.memory_space<vmem>>, vector<2x128xf32>
    tpu.vector_store %arg3[%c0_9, %c0_10], %13 {strides = array<i32>} : memref<2x128xf32, #tpu.memory_space<vmem>>, vector<2x128xf32>,
    return
  }
}

</mosaic_0001>

<bundles_post_ra>
// kernel: jstnet_forward.1
= control target key start
LH: loop header
LB: loop body
LE: loop exit
PB: predicated region body
PF: predicated region fallthrough
CT: control target
= control target key end

     0   :  { %v1140_v40 = vmov 0.0   ;;  %vm688_vm0 = vcmask 261120   ;;  %vm1141_vm1 = vmmov 0   ;;  %vm843_vm2 = vcmask 1041409   ;;  %s1450_s1 = inlined_call_operand.vmem [shape: bf16[128,32], index: 1, kind: input, shape index: {}]   ;;  %s1451_s0 = inlined_call_operand.vmem [shape: bf16[512,128], index: 0, kind: input, shape index: {}]   ;;  %s1452_s2 = inlined_call_operand.vmem [shape: bf16[33,128], index: 2, kind: input, shape index: {}]   ;;  %s1453_s3 = inlined_call_operand.vmem [shape: f32[2,128], index: 3, kind: output, shape index: {}]  }
   0x1   :  { %v1098_v0 = vld [vmem:[%s1450_s1] sm:$0xff]   ;;  %v1099_v1 = vld [vmem:[%s1450_s1 + $0x8] sm:$0xff]   ;;  %v1100_v2 = vld [vmem:[%s1450_s1 + $0x10] sm:$0xff]  }
   0x2   :  { %992 = vmatprep.subr.bf16.mxu0 %v1098_v0  ;;  %1080 = vmatprep.subr.bf16.mxu1 %v1098_v0  ;;  %v1101_v3 = vld [vmem:[%s1450_s1 + $0x18] sm:$0xff]   ;;  %v1106_v4 = vld [vmem:[%s1451_s0] sm:$0xff]   ;;  %v1103_v6 = vld [vmem:[%s1450_s1 + $0x28] sm:$0xff]  }
   0x3   :  { %993 = vmatpush3.bf16.msra.mxu0 %v1098_v0  ;;  %1088 = vmatpush3.bf16.msra.mxu1 %v1098_v0  ;;  %v1102_v5 = vld [vmem:[%s1450_s1 + $0x20] sm:$0xff]   ;;  %v1104_v7 = vld [vmem:[%s1450_s1 + $0x30] sm:$0xff]   ;;  %v1105_v8 = vld [vmem:[%s1450_s1 + $0x38] sm:$0xff]  }
   0x4   :  { %994 = vmatprep.subr.bf16.mxu0 %v1099_v1  ;;  %1081 = vmatprep.subr.bf16.mxu1 %v1099_v1  ;;  %v1124_v9 = vld [vmem:[%s1451_s0 + $0x90] sm:$0xff]   ;;  %v1107_v10 = vld [vmem:[%s1451_s0 + $0x8] sm:$0xff]   ;;  %v1125_v12 = vld [vmem:[%s1451_s0 + $0x98] sm:$0xff]  }
   0x5   :  { %1008 = vmatprep.mubr.bf16.mxu0 %v1106_v4  ;;  %v1108_v11 = vld [vmem:[%s1451_s0 + $0x10] sm:$0xff]   ;;  %1044 = vmatprep.mubr.bf16.mxu1 %v1124_v9  ;;  %v1126_v13 = vld [vmem:[%s1451_s0 + $0xa0] sm:$0xff]   ;;  %v1109_v14 = vld [vmem:[%s1451_s0 + $0x18] sm:$0xff]  }
   0x6   :  { %v1110_v15 = vld [vmem:[%s1451_s0 + $0x20] sm:$0xff]   ;;  %v1127_v16 = vld [vmem:[%s1451_s0 + $0xa8] sm:$0xff]   ;;  %v1128_v17 = vld [vmem:[%s1451_s0 + $0xb0] sm:$0xff]  }
   0x7   :  { %995 = vmatpush3.bf16.msra.mxu0 %v1099_v1  ;;  %1089 = vmatpush3.bf16.msra.mxu1 %v1099_v1  ;;  %v1111_v18 = vld [vmem:[%s1451_s0 + $0x28] sm:$0xff]   ;;  %v1129_v19 = vld [vmem:[%s1451_s0 + $0xb8] sm:$0xff]   ;;  %v1112_v20 = vld [vmem:[%s1451_s0 + $0x30] sm:$0xff]  }
   0x8   :  { %996 = vmatprep.subr.bf16.mxu0 %v1100_v2  ;;  %1082 = vmatprep.subr.bf16.mxu1 %v1100_v2  ;;  %v1130_v21 = vld [vmem:[%s1451_s0 + $0xc0] sm:$0xff]   ;;  %v1113_v22 = vld [vmem:[%s1451_s0 + $0x38] sm:$0xff]   ;;  %v1131_v23 = vld [vmem:[%s1451_s0 + $0xc8] sm:$0xff]  }
   0x9   :  { %v1114_v24 = vld [vmem:[%s1451_s0 + $0x40] sm:$0xff]   ;;  %v1132_v25 = vld [vmem:[%s1451_s0 + $0xd0] sm:$0xff]   ;;  %v1115_v26 = vld [vmem:[%s1451_s0 + $0x48] sm:$0xff]  }
   0xa   :  { %v1133_v27 = vld [vmem:[%s1451_s0 + $0xd8] sm:$0xff]   ;;  %v1116_v28 = vld [vmem:[%s1451_s0 + $0x50] sm:$0xff]   ;;  %v1134_v29 = vld [vmem:[%s1451_s0 + $0xe0] sm:$0xff]  }
   0xb   :  { %997 = vmatpush3.bf16.msra.mxu0 %v1100_v2  ;;  %1090 = vmatpush3.bf16.msra.mxu1 %v1100_v2  ;;  %v1117_v30 = vld [vmem:[%s1451_s0 + $0x58] sm:$0xff]   ;;  %v1135_v31 = vld [vmem:[%s1451_s0 + $0xe8] sm:$0xff]   ;;  %v1118_v32 = vld [vmem:[%s1451_s0 + $0x60] sm:$0xff]  }
   0xc   :  { %998 = vmatprep.subr.bf16.mxu0 %v1101_v3  ;;  %1083 = vmatprep.subr.bf16.mxu1 %v1101_v3  ;;  %v1136_v33 = vld [vmem:[%s1451_s0 + $0xf0] sm:$0xff]   ;;  %v1119_v34 = vld [vmem:[%s1451_s0 + $0x68] sm:$0xff]   ;;  %v1137_v35 = vld [vmem:[%s1451_s0 + $0xf8] sm:$0xff]  }
   0xd   :  { %v1120_v36 = vld [vmem:[%s1451_s0 + $0x70] sm:$0xff]   ;;  %v1121_v37 = vld [vmem:[%s1451_s0 + $0x78] sm:$0xff]   ;;  %v1122_v38 = vld [vmem:[%s1451_s0 + $0x80] sm:$0xff]  }
   0xe   :  { %v1123_v39 = vld [vmem:[%s1451_s0 + $0x88] sm:$0xff]   ;;  %v1138_v41 = vld [vmem:[%s1452_s2] sm:$0xff]  }
   0xf   :  { %999 = vmatpush3.bf16.msra.mxu0 %v1101_v3  ;;  %1091 = vmatpush3.bf16.msra.mxu1 %v1101_v3 }
  0x10   :  { %1000 = vmatprep.subr.bf16.mxu0 %v1102_v5  ;;  %1084 = vmatprep.subr.bf16.mxu1 %v1102_v5 }
  0x13   :  { %1001 = vmatpush3.bf16.msra.mxu0 %v1102_v5  ;;  %1092 = vmatpush3.bf16.msra.mxu1 %v1102_v5 }
  0x14   :  { %1002 = vmatprep.subr.bf16.mxu0 %v1103_v6  ;;  %1085 = vmatprep.subr.bf16.mxu1 %v1103_v6 }
  0x17   :  { %1003 = vmatpush3.bf16.msra.mxu0 %v1103_v6  ;;  %1093 = vmatpush3.bf16.msra.mxu1 %v1103_v6 }
  0x18   :  { %1004 = vmatprep.subr.bf16.mxu0 %v1104_v7  ;;  %1086 = vmatprep.subr.bf16.mxu1 %v1104_v7 }
  0x1b   :  { %1005 = vmatpush3.bf16.msra.mxu0 %v1104_v7  ;;  %1094 = vmatpush3.bf16.msra.mxu1 %v1104_v7 }
  0x1c   :  { %1006 = vmatprep.subr.bf16.mxu0 %v1105_v8  ;;  %1087 = vmatprep.subr.bf16.mxu1 %v1105_v8 }
  0x1f   :  { %1007 = vmatpush3.bf16.msra.mxu0 %v1105_v8  ;;  %1095 = vmatpush3.bf16.msra.mxu1 %v1105_v8 }
  0x20   :  { %1072 = vmatprep.subr.bf16.mxu1 %v1140_v40 }
  0x22   :  { %1009 = vmatmul.mubr.bf16.vlgmr.msra.gmra.mrb[0].mxu0 %v1107_v10  ;;  %1045 = vmatmul.mubr.bf16.vlgmr.msra.gmra.mrb[0].mxu1 %v1125_v12 }
  0x23   :  { %1012 = vmatprep.mubr.bf16.mxu0 %v1108_v11  ;;  %1048 = vmatprep.mubr.bf16.mxu1 %v1126_v13 }
  0x24   :  { %1073 = vmatpush3.bf16.msra.mxu1 %v1138_v41 }
  0x25   :  { %1074 = vmatprep.subr.bf16.mxu1 %v1140_v40 }
  0x2a   :  { %1013 = vmatmul.mubr.bf16.gmra.mrb[4].mxu0 %v1109_v14  ;;  %1049 = vmatmul.mubr.bf16.gmra.mrb[4].mxu1 %v1127_v16 }
  0x2b   :  { %1016 = vmatprep.mubr.bf16.mxu0 %v1110_v15  ;;  %1052 = vmatprep.mubr.bf16.mxu1 %v1128_v17 }
  0x32   :  { %1017 = vmatmul.mubr.bf16.gmra.mrb[8].mxu0 %v1111_v18  ;;  %1053 = vmatmul.mubr.bf16.gmra.mrb[8].mxu1 %v1129_v19 }
  0x33   :  { %1020 = vmatprep.mubr.bf16.mxu0 %v1112_v20  ;;  %1056 = vmatprep.mubr.bf16.mxu1 %v1130_v21 }
  0x3a   :  { %1021 = vmatmul.mubr.bf16.gmra.mrb[12].mxu0 %v1113_v22  ;;  %1057 = vmatmul.mubr.bf16.gmra.mrb[12].mxu1 %v1131_v23 }
  0x3b   :  { %1024 = vmatprep.mubr.bf16.mxu0 %v1114_v24  ;;  %1060 = vmatprep.mubr.bf16.mxu1 %v1132_v25 }
  0x42   :  { %1025 = vmatmul.mubr.bf16.gmra.mrb[16].mxu0 %v1115_v26  ;;  %1061 = vmatmul.mubr.bf16.gmra.mrb[16].mxu1 %v1133_v27  ;;  %v1139_v26 = vld [vmem:[%s1452_s2 + $0x8] sm:$0xff]  }
  0x43   :  { %1028 = vmatprep.mubr.bf16.mxu0 %v1116_v28  ;;  %1064 = vmatprep.mubr.bf16.mxu1 %v1134_v29 }
  0x44   :  { %1075 = vmatpush3.bf16.msra.mxu1 %v1139_v26 }
  0x4a   :  { %1029 = vmatmul.mubr.bf16.gmra.mrb[20].mxu0 %v1117_v30  ;;  %1065 = vmatmul.mubr.bf16.gmra.mrb[20].mxu1 %v1135_v31 }
  0x4b   :  { %1032 = vmatprep.mubr.bf16.mxu0 %v1118_v32  ;;  %1068 = vmatprep.mubr.bf16.mxu1 %v1136_v33 }
  0x52   :  { %1033 = vmatmul.mubr.bf16.gmra.mrb[24].mxu0 %v1119_v34  ;;  %1069 = vmatmul.mubr.bf16.gmra.mrb[24].mxu1 %v1137_v35 }
  0x53   :  { %1036 = vmatprep.mubr.bf16.mxu0 %v1120_v36  ;;  %1076 = vmatprep.mubr.msk.bf16.mxu1 %vm1141_vm1, %v1140_v40 }
  0x5a   :  { %1037 = vmatmul.mubr.bf16.gmra.mrb[28].mxu0 %v1121_v37 }
  0x5b   :  { %1040 = vmatprep.mubr.bf16.mxu0 %v1122_v38 }
  0x62   :  { %1041 = vmatmul.mubr.bf16.gmra.mrb[32].mxu0 %v1123_v39 }
  0xf5   :  { %v1010_v42 = vpop.f32.mrb[0].mxu0  ;;  %v1287_v43 = vpop.f32.mrb[0].mxu1 }
  0xf6   :  { %v369_v44 = vpop.f32.mrb[1].mxu0  ;;  %v1289_v45 = vpop.f32.mrb[1].mxu1  ;;  %v626_v51 = vmax.f32 %v1010_v42, 0.0 }
  0xf7   :  { %v624_v46 = vmax.f32 %v369_v44, 0.0  ;;  %v1011_v47 = vpop.f32.mrb[2].mxu0  ;;  %v1291_v48 = vpop.f32.mrb[2].mxu1 }
  0xf8   :  { %v372_v49 = vpop.f32.mrb[3].mxu0  ;;  %v1293_v50 = vpop.f32.mrb[3].mxu1  ;;  %v627_v54 = vmax.f32 %v1011_v47, 0.0  ;;  %v692_v57 = vsel %vm688_vm0, %v626_v51, 0.0 }
  0xf9   :  { %v625_v52 = vmax.f32 %v372_v49, 0.0  ;;  %v689_v53 = vsel %vm688_vm0, %v624_v46, 0.0 }
  0xfa   :  { %v694_v63 = vsel %vm688_vm0, %v627_v54, 0.0 }
  0xfb   :  { %v690_v55 = vsel %vm688_vm0, %v625_v52, 0.0 }
  0xfc   :  { %v691_v56 = vadd.f32 %v690_v55, %v689_v53 }
  0xfd   :  { %v1014_v58 = vpop.f32.mrb[4].mxu0  ;;  %v1298_v59 = vpop.f32.mrb[4].mxu1 }
  0xfe   :  { %v693_v60 = vadd.f32 %v692_v57, %v691_v56  ;;  %v385_v61 = vpop.f32.mrb[5].mxu0  ;;  %v1300_v62 = vpop.f32.mrb[5].mxu1  ;;  %v630_v6 = vmax.f32 %v1014_v58, 0.0 }
  0xff   :  { %v628_v0 = vmax.f32 %v385_v61, 0.0  ;;  %v1015_v1 = vpop.f32.mrb[6].mxu0  ;;  %v1303_v2 = vpop.f32.mrb[6].mxu1 }
 0x100   :  { %v695_v3 = vadd.f32 %v694_v63, %v693_v60  ;;  %v388_v4 = vpop.f32.mrb[7].mxu0  ;;  %v1305_v5 = vpop.f32.mrb[7].mxu1  ;;  %v631_v10 = vmax.f32 %v1015_v1, 0.0  ;;  %v700_v13 = vsel %vm688_vm0, %v630_v6, 0.0 }
 0x101   :  { %v696_v7 = vsel %vm688_vm0, %v628_v0, 0.0  ;;  %v629_v8 = vmax.f32 %v388_v4, 0.0 }
 0x102   :  { %v697_v9 = vadd.f32 %v696_v7, %v695_v3  ;;  %v702_v19 = vsel %vm688_vm0, %v631_v10, 0.0 }
 0x103   :  { %v698_v11 = vsel %vm688_vm0, %v629_v8, 0.0 }
 0x104   :  { %v699_v12 = vadd.f32 %v698_v11, %v697_v9 }
 0x105   :  { %v1018_v14 = vpop.f32.mrb[8].mxu0  ;;  %v1310_v15 = vpop.f32.mrb[8].mxu1 }
 0x106   :  { %v701_v16 = vadd.f32 %v700_v13, %v699_v12  ;;  %v401_v17 = vpop.f32.mrb[9].mxu0  ;;  %v1312_v18 = vpop.f32.mrb[9].mxu1  ;;  %v634_v27 = vmax.f32 %v1018_v14, 0.0 }
 0x107   :  { %v632_v20 = vmax.f32 %v401_v17, 0.0  ;;  %v1019_v21 = vpop.f32.mrb[10].mxu0  ;;  %v1315_v22 = vpop.f32.mrb[10].mxu1 }
 0x108   :  { %v703_v23 = vadd.f32 %v702_v19, %v701_v16  ;;  %v404_v24 = vpop.f32.mrb[11].mxu0  ;;  %v1317_v25 = vpop.f32.mrb[11].mxu1  ;;  %v635_v31 = vmax.f32 %v1019_v21, 0.0  ;;  %v708_v34 = vsel %vm688_vm0, %v634_v27, 0.0 }
 0x109   :  { %v704_v28 = vsel %vm688_vm0, %v632_v20, 0.0  ;;  %v633_v29 = vmax.f32 %v404_v24, 0.0 }
 0x10a   :  { %v705_v30 = vadd.f32 %v704_v28, %v703_v23  ;;  %v710_v41 = vsel %vm688_vm0, %v635_v31, 0.0 }
 0x10b   :  { %v706_v32 = vsel %vm688_vm0, %v633_v29, 0.0 }
 0x10c   :  { %v707_v33 = vadd.f32 %v706_v32, %v705_v30 }
 0x10d   :  { %v1022_v35 = vpop.f32.mrb[12].mxu0  ;;  %v1326_v36 = vpop.f32.mrb[12].mxu1 }
 0x10e   :  { %v709_v37 = vadd.f32 %v708_v34, %v707_v33  ;;  %v417_v38 = vpop.f32.mrb[13].mxu0  ;;  %v1328_v39 = vpop.f32.mrb[13].mxu1  ;;  %v638_v40 = vmax.f32 %v1022_v35, 0.0 }
 0x10f   :  { %v636_v42 = vmax.f32 %v417_v38, 0.0  ;;  %v1023_v44 = vpop.f32.mrb[14].mxu0  ;;  %v1331_v46 = vpop.f32.mrb[14].mxu1 }
 0x110   :  { %v711_v47 = vadd.f32 %v710_v41, %v709_v37  ;;  %v420_v49 = vpop.f32.mrb[15].mxu0  ;;  %v1333_v51 = vpop.f32.mrb[15].mxu1  ;;  %v639_v55 = vmax.f32 %v1023_v44, 0.0  ;;  %v716_v58 = vsel %vm688_vm0, %v638_v40, 0.0 }
 0x111   :  { %v712_v52 = vsel %vm688_vm0, %v636_v42, 0.0  ;;  %v637_v53 = vmax.f32 %v420_v49, 0.0 }
 0x112   :  { %v713_v54 = vadd.f32 %v712_v52, %v711_v47  ;;  %v718_v3 = vsel %vm688_vm0, %v639_v55, 0.0 }
 0x113   :  { %v714_v56 = vsel %vm688_vm0, %v637_v53, 0.0 }
 0x114   :  { %v715_v57 = vadd.f32 %v714_v56, %v713_v54 }
 0x115   :  { %v1026_v60 = vpop.f32.mrb[16].mxu0  ;;  %v1338_v61 = vpop.f32.mrb[16].mxu1 }
 0x116   :  { %v717_v63 = vadd.f32 %v716_v58, %v715_v57  ;;  %v433_v0 = vpop.f32.mrb[17].mxu0  ;;  %v1340_v1 = vpop.f32.mrb[17].mxu1  ;;  %v642_v11 = vmax.f32 %v1026_v60, 0.0 }
 0x117   :  { %v640_v4 = vmax.f32 %v433_v0, 0.0  ;;  %v1027_v6 = vpop.f32.mrb[18].mxu0  ;;  %v1343_v7 = vpop.f32.mrb[18].mxu1 }
 0x118   :  { %v719_v8 = vadd.f32 %v718_v3, %v717_v63  ;;  %v436_v9 = vpop.f32.mrb[19].mxu0  ;;  %v1345_v10 = vpop.f32.mrb[19].mxu1  ;;  %v643_v16 = vmax.f32 %v1027_v6, 0.0  ;;  %v724_v20 = vsel %vm688_vm0, %v642_v11, 0.0 }
 0x119   :  { %v720_v12 = vsel %vm688_vm0, %v640_v4, 0.0  ;;  %v641_v13 = vmax.f32 %v436_v9, 0.0 }
 0x11a   :  { %v721_v14 = vadd.f32 %v720_v12, %v719_v8  ;;  %v726_v28 = vsel %vm688_vm0, %v643_v16, 0.0 }
 0x11b   :  { %v722_v17 = vsel %vm688_vm0, %v641_v13, 0.0 }
 0x11c   :  { %v723_v19 = vadd.f32 %v722_v17, %v721_v14 }
 0x11d   :  { %v1030_v21 = vpop.f32.mrb[20].mxu0  ;;  %v1350_v23 = vpop.f32.mrb[20].mxu1 }
 0x11e   :  { %v725_v24 = vadd.f32 %v724_v20, %v723_v19  ;;  %v449_v26 = vpop.f32.mrb[21].mxu0  ;;  %v1352_v27 = vpop.f32.mrb[21].mxu1  ;;  %v646_v35 = vmax.f32 %v1030_v21, 0.0 }
 0x11f   :  { %v644_v29 = vmax.f32 %v449_v26, 0.0  ;;  %v1031_v30 = vpop.f32.mrb[22].mxu0  ;;  %v1355_v31 = vpop.f32.mrb[22].mxu1 }
 0x120   :  { %v727_v32 = vadd.f32 %v726_v28, %v725_v24  ;;  %v452_v33 = vpop.f32.mrb[23].mxu0  ;;  %v1357_v34 = vpop.f32.mrb[23].mxu1  ;;  %v647_v42 = vmax.f32 %v1031_v30, 0.0  ;;  %v732_v49 = vsel %vm688_vm0, %v646_v35, 0.0 }
 0x121   :  { %v728_v37 = vsel %vm688_vm0, %v644_v29, 0.0  ;;  %v645_v38 = vmax.f32 %v452_v33, 0.0 }
 0x122   :  { %v729_v41 = vadd.f32 %v728_v37, %v727_v32  ;;  %v734_v56 = vsel %vm688_vm0, %v647_v42, 0.0 }
 0x123   :  { %v730_v44 = vsel %vm688_vm0, %v645_v38, 0.0 }
 0x124   :  { %v731_v47 = vadd.f32 %v730_v44, %v729_v41 }
 0x125   :  { %v1034_v40 = vpop.f32.mrb[24].mxu0  ;;  %v1362_v52 = vpop.f32.mrb[24].mxu1 }
 0x126   :  { %v733_v53 = vadd.f32 %v732_v49, %v731_v47  ;;  %v465_v54 = vpop.f32.mrb[25].mxu0  ;;  %v1364_v55 = vpop.f32.mrb[25].mxu1  ;;  %v650_v4 = vmax.f32 %v1034_v40, 0.0 }
 0x127   :  { %v648_v57 = vmax.f32 %v465_v54, 0.0  ;;  %v1035_v58 = vpop.f32.mrb[26].mxu0  ;;  %v1367_v60 = vpop.f32.mrb[26].mxu1 }
 0x128   :  { %v735_v63 = vadd.f32 %v734_v56, %v733_v53  ;;  %v468_v0 = vpop.f32.mrb[27].mxu0  ;;  %v1369_v3 = vpop.f32.mrb[27].mxu1  ;;  %v651_v11 = vmax.f32 %v1035_v58, 0.0  ;;  %v740_v14 = vsel %vm688_vm0, %v650_v4, 0.0 }
 0x129   :  { %v736_v6 = vsel %vm688_vm0, %v648_v57, 0.0  ;;  %v649_v8 = vmax.f32 %v468_v0, 0.0 }
 0x12a   :  { %v737_v9 = vadd.f32 %v736_v6, %v735_v63  ;;  %v742_v20 = vsel %vm688_vm0, %v651_v11, 0.0  ;;  %v660_v6 = vmax.f32 %v1289_v45, 0.0  ;;  %v664_v45 = vmax.f32 %v1300_v62, 0.0 }
 0x12b   :  { %v738_v12 = vsel %vm688_vm0, %v649_v8, 0.0  ;;  %v668_v62 = vmax.f32 %v1312_v18, 0.0  ;;  %v672_v18 = vmax.f32 %v1328_v39, 0.0  ;;  %v676_v39 = vmax.f32 %v1340_v1, 0.0 }
 0x12c   :  { %v739_v13 = vadd.f32 %v738_v12, %v737_v9  ;;  %v680_v1 = vmax.f32 %v1352_v27, 0.0  ;;  %v684_v27 = vmax.f32 %v1364_v55, 0.0  ;;  %v687_v55 = vmax.f32 %v1367_v60, 0.0 }
 0x12d   :  { %v1038_v16 = vpop.f32.mrb[28].mxu0 }
 0x12e   :  { %v741_v17 = vadd.f32 %v740_v14, %v739_v13  ;;  %v481_v19 = vpop.f32.mrb[29].mxu0  ;;  %v654_v29 = vmax.f32 %v1038_v16, 0.0  ;;  %v765_v13 = vsel %vm688_vm0, %v660_v6, 0.0  ;;  %v661_v14 = vmax.f32 %v1293_v50, 0.0 }
 0x12f   :  { %v652_v21 = vmax.f32 %v481_v19, 0.0  ;;  %v1039_v24 = vpop.f32.mrb[30].mxu0  ;;  %v665_v50 = vmax.f32 %v1305_v5, 0.0  ;;  %v669_v5 = vmax.f32 %v1317_v25, 0.0  ;;  %v673_v25 = vmax.f32 %v1333_v51, 0.0 }
 0x130   :  { %v743_v26 = vadd.f32 %v742_v20, %v741_v17  ;;  %v484_v28 = vpop.f32.mrb[31].mxu0  ;;  %v655_v35 = vmax.f32 %v1039_v24, 0.0  ;;  %v748_v41 = vsel %vm688_vm0, %v654_v29, 0.0  ;;  %v662_v17 = vmax.f32 %v1287_v43, 0.0 }
 0x131   :  { %v744_v30 = vsel %vm688_vm0, %v652_v21, 0.0  ;;  %v653_v32 = vmax.f32 %v484_v28, 0.0  ;;  %v663_v20 = vmax.f32 %v1291_v48, 0.0  ;;  %v767_v21 = vsel %vm688_vm0, %v661_v14, 0.0 }
 0x132   :  { %v745_v33 = vadd.f32 %v744_v30, %v743_v26  ;;  %v750_v49 = vsel %vm688_vm0, %v655_v35, 0.0  ;;  %v769_v26 = vsel %vm688_vm0, %v662_v17, 0.0  ;;  %v773_v30 = vsel %vm688_vm0, %v664_v45, 0.0 }
 0x133   :  { %v746_v37 = vsel %vm688_vm0, %v653_v32, 0.0  ;;  %v771_v29 = vsel %vm688_vm0, %v663_v20, 0.0  ;;  %v666_v43 = vmax.f32 %v1298_v59, 0.0  ;;  %v667_v48 = vmax.f32 %v1303_v2, 0.0 }
 0x134   :  { %v747_v38 = vadd.f32 %v746_v37, %v745_v33  ;;  %v775_v35 = vsel %vm688_vm0, %v665_v50, 0.0  ;;  %v670_v59 = vmax.f32 %v1310_v15, 0.0  ;;  %v671_v2 = vmax.f32 %v1315_v22, 0.0 }
 0x135   :  { %v1042_v42 = vpop.f32.mrb[32].mxu0  ;;  %v674_v15 = vmax.f32 %v1326_v36, 0.0  ;;  %v675_v22 = vmax.f32 %v1331_v46, 0.0  ;;  %v791_v6 = vsel %vm688_vm0, %v673_v25, 0.0  ;;  %v677_v51 = vmax.f32 %v1345_v10, 0.0 }
 0x136   :  { %v749_v44 = vadd.f32 %v748_v41, %v747_v38  ;;  %v497_v47 = vpop.f32.mrb[33].mxu0  ;;  %v658_v57 = vmax.f32 %v1042_v42, 0.0  ;;  %v777_v38 = vsel %vm688_vm0, %v666_v43, 0.0  ;;  %v779_v42 = vsel %vm688_vm0, %v667_v48, 0.0 }
 0x137   :  { %v656_v40 = vmax.f32 %v497_v47, 0.0  ;;  %v1043_v53 = vpop.f32.mrb[34].mxu0  ;;  %v678_v36 = vmax.f32 %v1338_v61, 0.0  ;;  %v679_v46 = vmax.f32 %v1343_v7, 0.0  ;;  %v799_v17 = vsel %vm688_vm0, %v677_v51, 0.0 }
 0x138   :  { %v1379_v54 = vadd.f32 %v750_v49, %v749_v44  ;;  %v500_v56 = vpop.f32.mrb[35].mxu0  ;;  %v659_v0 = vmax.f32 %v1043_v53, 0.0  ;;  %v761_v9 = vsel %vm688_vm0, %v658_v57, 0.0  ;;  %v781_v44 = vsel %vm688_vm0, %v668_v62, 0.0 }
 0x139   :  { %v657_v58 = vmax.f32 %v500_v56, 0.0  ;;  %v758_v63 = vsel %vm688_vm0, %v656_v40, 0.0  ;;  %v783_v40 = vsel %vm688_vm0, %v669_v5, 0.0  ;;  %v785_v56 = vsel %vm688_vm0, %v670_v59, 0.0 }
 0x13a   :  { %v763_v12 = vsel %vm688_vm0, %v659_v0, 0.0  ;;  %v801_v20 = vsel %vm688_vm0, %v678_v36, 0.0  ;;  %v803_v45 = vsel %vm688_vm0, %v679_v46, 0.0  ;;  %v681_v10 = vmax.f32 %v1357_v34, 0.0 }
 0x13b   :  { %v759_v4 = vsel %vm688_vm0, %v657_v58, 0.0  ;;  %v787_v58 = vsel %vm688_vm0, %v671_v2, 0.0  ;;  %v682_v61 = vmax.f32 %v1350_v23, 0.0  ;;  %v683_v7 = vmax.f32 %v1355_v31, 0.0 }
 0x13c   :  { %v760_v8 = vadd.f32 %v759_v4, %v758_v63  ;;  %v789_v63 = vsel %vm688_vm0, %v672_v18, 0.0  ;;  %v813_v34 = vsel %vm688_vm0, %v684_v27, 0.0  ;;  %v685_v48 = vmax.f32 %v1369_v3, 0.0 }
 0x13d   :  { %v686_v31 = vmax.f32 %v1362_v52, 0.0  ;;  %v819_v5 = vsel %vm688_vm0, %v687_v55, 0.0 }
 0x13e   :  { %v762_v11 = vadd.f32 %v761_v9, %v760_v8  ;;  %v793_v9 = vsel %vm688_vm0, %v674_v15, 0.0 }
 0x140   :  { %v764_v16 = vadd.f32 %v763_v12, %v762_v11  ;;  %v795_v12 = vsel %vm688_vm0, %v675_v22, 0.0 }
 0x142   :  { %v766_v19 = vadd.f32 %v765_v13, %v764_v16  ;;  %v797_v13 = vsel %vm688_vm0, %v676_v39, 0.0 }
 0x144   :  { %v768_v24 = vadd.f32 %v767_v21, %v766_v19 }
 0x146   :  { %v770_v28 = vadd.f32 %v769_v26, %v768_v24  ;;  %v805_v24 = vsel %vm688_vm0, %v680_v1, 0.0 }
 0x148   :  { %v772_v32 = vadd.f32 %v771_v29, %v770_v28  ;;  %v807_v29 = vsel %vm688_vm0, %v681_v10, 0.0 }
 0x14a   :  { %v774_v33 = vadd.f32 %v773_v30, %v772_v32  ;;  %v752_v30 = vrot.slane %v1379_v54, 4  ;;  %v809_v32 = vsel %vm688_vm0, %v682_v61, 0.0 }
 0x14c   :  { %v776_v37 = vadd.f32 %v775_v35, %v774_v33  ;;  %v811_v33 = vsel %vm688_vm0, %v683_v7, 0.0  ;;  %v753_v23 = vadd.f32 %v752_v30, %v1379_v54 }
 0x14e   :  { %v778_v41 = vadd.f32 %v777_v38, %v776_v37  ;;  %v815_v37 = vsel %vm688_vm0, %v685_v48, 0.0  ;;  %v754_v38 = vrot.slane %v753_v23, 2 }
 0x150   :  { %v780_v47 = vadd.f32 %v779_v42, %v778_v41  ;;  %v817_v42 = vsel %vm688_vm0, %v686_v31, 0.0 }
 0x152   :  { %v782_v49 = vadd.f32 %v781_v44, %v780_v47  ;;  %v755_v47 = vadd.f32 %v754_v38, %v753_v23 }
 0x154   :  { %v784_v53 = vadd.f32 %v783_v40, %v782_v49  ;;  %v756_v49 = vrot.slane %v755_v47, 1 }
 0x156   :  { %v786_v57 = vadd.f32 %v785_v56, %v784_v53  ;;  %v757_v40 = vadd.f32 %v756_v49, %v755_v47 }
 0x158   :  { %v788_v0 = vadd.f32 %v787_v58, %v786_v57  ;;  %v827_v53 = vpack.c.bf16 %v757_v40, %v757_v40 }
 0x15a   :  { %v790_v4 = vadd.f32 %v789_v63, %v788_v0  ;;  %v841_v57 = vunpack.c.l.b16 %v827_v53  ;;  %v835_v0 = vlaneseq }
 0x15c   :  { %v792_v8 = vadd.f32 %v791_v6, %v790_v4  ;;  %v836_v15 = vshrl.u32 %v835_v0, 7  ;;  %v833_v4 = vld [vmem:[%s1452_s2 + $0x10] sm:$0x1] }
 0x15d   :  { %v834_v22 = vunpack.c.l.bf16 %v833_v4 }
 0x15e   :  { %v794_v11 = vadd.f32 %v793_v9, %v792_v8  ;;  %v837_v6 = vsub.s32 0, %v836_v15 }
 0x160   :  { %v796_v14 = vadd.f32 %v795_v12, %v794_v11  ;;  %v838_v39 = vrot.slane %v834_v22, %v837_v6 }
 0x162   :  { %v798_v16 = vadd.f32 %v797_v13, %v796_v14 }
 0x164   :  { %v800_v19 = vadd.f32 %v799_v17, %v798_v16 }
 0x166   :  { %v802_v21 = vadd.f32 %v801_v20, %v800_v19 }
 0x168   :  { %v804_v26 = vadd.f32 %v803_v45, %v802_v21 }
 0x16a   :  { %v806_v28 = vadd.f32 %v805_v24, %v804_v26 }
 0x16c   :  { %v808_v50 = vadd.f32 %v807_v29, %v806_v28 }
 0x16e   :  { %v810_v43 = vadd.f32 %v809_v32, %v808_v50 }
 0x170   :  { %v812_v35 = vadd.f32 %v811_v33, %v810_v43 }
 0x172   :  { %v814_v62 = vadd.f32 %v813_v34, %v812_v35 }
 0x174   :  { %v816_v41 = vadd.f32 %v815_v37, %v814_v62 }
 0x176   :  { %v818_v44 = vadd.f32 %v817_v42, %v816_v41 }
 0x178   :  { %v820_v59 = vadd.f32 %v819_v5, %v818_v44 }
 0x17a   :  { %v821_v3 = vrot.slane %v820_v59, 4 }
 0x17c   :  { %v822_v54 = vadd.f32 %v821_v3, %v820_v59 }
 0x17e   :  { %v823_v2 = vrot.slane %v822_v54, 2 }
 0x180   :  { %v824_v52 = vadd.f32 %v823_v2, %v822_v54 }
 0x182   :  { %v825_v18 = vrot.slane %v824_v52, 1 }
 0x184   :  { %v826_v60 = vadd.f32 %v825_v18, %v824_v52 }
 0x186   :  { %v828_v56 = vpack.c.bf16 %v826_v60, %v826_v60 }
 0x188   :  { %v842_v58 = vunpack.c.l.b16 %v828_v56 }
 0x18a   :  { %v844_v63 = vsel %vm843_vm2, %v842_v58, %v841_v57 }
 0x18b   :  { %v845_v25 = vpack.c.b16 %v844_v63, %v844_v63 }
 0x18d   :  { %1077 = vmatmul.mubr.msk.bf16.vlgmr.msra.gmra.mrb[28].mxu1 %vm688_vm0, %v845_v25 }
 0x260   :  { %v895_v8 = vpop.f32.mrb[28].mxu1 }
 0x261   :  { %v896_v9 = vadd.f32 %v895_v8, %v838_v39  ;;  %v1078_v11 = vpop.f32.mrb[29].mxu1 }
 0x262   :  { %v898_v12 = vpop.f32.mrb[30].mxu1 }
 0x263   :  { %901 = vst [vmem:[%s1453_s3] sm:$0x3] %v896_v9  ;;  %v1079_v13 = vpop.f32.mrb[31].mxu1 }

</bundles_post_ra>
